<compile_context>
chip_gen: v6e
topology: v6e:2x2x1
jax: 0.10.0
libtpu: 0.0.40
codegen_flags: <defaults>
</compile_context>

<pallas_src>
import jax
import jax.numpy as jnp
from jax.experimental import pallas as pl
from jax.experimental.pallas import tpu as pltpu

NEG_INF = -1e9
LANE = 128


def _round_up(v, m):
    return ((v + m - 1) // m) * m


# ----------------------------------------------------------------------------
# Pallas kernel: one relational GAT layer.
# grid = (row_tiles, heads); rows "parallel", heads accumulate ("arbitrary").
# ----------------------------------------------------------------------------
def rgat_layer_kernel(x_ref, scale_ref, sdst_ref, ssrc_ref, rel_ref, o_ref):
    h = pl.program_id(1)

    # attention logits: rows = dst nodes of this tile, cols = src neighbors.
    # adjacency mask (-1e9 additive bias) is pre-folded into rel_ref.
    score = sdst_ref[...] + ssrc_ref[...] + rel_ref[...].astype(jnp.float32)
    score = jnp.maximum(score, 0.2 * score)            # LeakyReLU(0.2)

    # masked softmax over neighbors; normalization deferred to the (tm, D)
    # aggregation result (one small scale instead of a (tm, N) multiply).
    m = jnp.max(score, axis=-1, keepdims=True)
    e = jnp.exp(score - m)                             # (tm, N), values in [0,1]
    denom = jnp.sum(e, axis=-1, keepdims=True)         # (tm, 1), >= 1 (self loop)

    # neighbor aggregation on the MXU (bf16 operands, f32 accumulate)
    agg = jnp.dot(e.astype(jnp.bfloat16), x_ref[...],
                  preferred_element_type=jnp.float32)  # (tm, D)

    # scale_ref = w_h / H : diagonal weight and head-mean folded into one factor
    contrib = agg * pl.reciprocal(denom, approx=True) * scale_ref[...]

    @pl.when(h == 0)
    def _():
        o_ref[...] = contrib

    @pl.when(h > 0)
    def _():
        o_ref[...] = o_ref[...] + contrib


def _vmem_limit_bytes():
    try:
        cap = int(pltpu.get_tpu_info().vmem_capacity_bytes)
    except Exception:
        cap = 64 * 1024 * 1024          # conservative fallback (v7x per-TC VMEM)
    return cap * 7 // 8                 # ~112 MiB v5e/v6e, ~56 MiB v7x


def _default_tm():
    try:
        kind = jax.devices()[0].device_kind.lower()
    except Exception:
        kind = ""
    # v6e: 256-wide MXU + 128 MiB VMEM -> bigger row tile.  Keep 128 on v5e
    # (128-wide MXU) and v7x (only 64 MiB VMEM).
    return 256 if "v6" in kind else 128


def rgat_layer(x_bf16, scale, s_dst, s_src, rel, *, tm=None):
    """One relational multi-head GAT layer on padded, lane-dense arrays.

    x_bf16: (N, D)     node features, bf16 (N, D multiples of 128)
    scale:  (H, 1, D)  per-head diag weight * 1/H, f32
    s_dst:  (H, N, 1)  precomputed dst attention projection, f32
    s_src:  (H, 1, N)  precomputed src attention projection, f32
    rel:    (H, N, N)  relation logits + adjacency bias (-1e9 off-edge), bf16
    returns (N, D)     mean over heads, f32
    """
    N, D = x_bf16.shape
    H = scale.shape[0]
    if tm is None:
        tm = _default_tm()
    tm = min(tm, N)
    while N % tm:                      # N is a multiple of 128, so tm >= 128
        tm //= 2
    grid = (N // tm, H)

    return pl.pallas_call(
        rgat_layer_kernel,
        out_shape=jax.ShapeDtypeStruct((N, D), jnp.float32),
        grid_spec=pltpu.PrefetchScalarGridSpec(
            num_scalar_prefetch=0,
            grid=grid,
            in_specs=[
                # TODO(synk): mark the constant-index x/scale/s_src specs
                # single-buffered (pipeline_mode=pl.Buffered(1)) once that
                # path is confirmed in the installed Pallas; double-buffering
                # them is wasted VMEM (matters most on v7x's 64 MiB).
                pl.BlockSpec((N, D), lambda i, h: (0, 0)),                     # x (bf16)
                pl.BlockSpec((pl.Squeezed(), 1, D), lambda i, h: (h, 0, 0)),   # w/H
                pl.BlockSpec((pl.Squeezed(), tm, 1), lambda i, h: (h, i, 0)),  # s_dst
                pl.BlockSpec((pl.Squeezed(), 1, N), lambda i, h: (h, 0, 0)),   # s_src
                pl.BlockSpec((pl.Squeezed(), tm, N), lambda i, h: (h, i, 0)),  # rel+mask
            ],
            out_specs=pl.BlockSpec((tm, D), lambda i, h: (i, 0)),
        ),
        compiler_params=pltpu.CompilerParams(
            dimension_semantics=("parallel", "arbitrary"),
            vmem_limit_bytes=_vmem_limit_bytes()),
    )(x_bf16, scale, s_dst, s_src, rel)


# ----------------------------------------------------------------------------
# Glue (plain JAX): normalization, padding, dense edge scatter, layer stack.
# ----------------------------------------------------------------------------
def l2_normalize(v, axis=1, eps=1e-12):
    # matches torch.nn.functional.normalize(p=2, dim=axis)
    n = jnp.sqrt(jnp.sum(v * v, axis=axis, keepdims=True))
    return v / jnp.maximum(n, eps)


def build_adj_bias(A, n_pad):
    """Additive mask: 0.0 on edges (dst<-src) and self loops, -1e9 elsewhere."""
    src, dst = A[0], A[2]
    adj = jnp.zeros((n_pad, n_pad), jnp.float32)
    adj = adj.at[dst, src].set(1.0)
    idx = jnp.arange(n_pad)
    adj = adj.at[idx, idx].set(1.0)           # self loops keep softmax defined
    return jnp.where(adj > 0, 0.0, NEG_INF).astype(jnp.float32)


def dense_rel_bias(r, a_rel, A, adj_bias, n_pad):
    """Per-head relation logits with the adjacency mask folded in, bf16."""
    src, rel_ids, dst = A[0], A[1], A[2]
    proj = r[rel_ids] @ a_rel.T                                  # (E, H)
    rel = jnp.zeros((a_rel.shape[0], n_pad, n_pad), jnp.float32)
    rel = rel.at[:, dst, src].add(proj.T)                        # (H, N, N)
    return (rel + adj_bias[None]).astype(jnp.bfloat16)


def init_params(key, n_units, n_heads):
    """Deterministic parameter init (diag=True, init_func=ones_ for weights)."""
    num_layer = len(n_units) - 1
    layers = []
    for i in range(num_layer):
        d = n_units[i + 1]
        h = n_heads[i]
        key, k1, k2, k3 = jax.random.split(key, 4)
        layers.append({
            "w": jnp.ones((h, d), jnp.float32),              # nn.init.ones_
            "a_dst": 0.1 * jax.random.normal(k1, (h, d), jnp.float32),
            "a_src": 0.1 * jax.random.normal(k2, (h, d), jnp.float32),
            "a_rel": 0.1 * jax.random.normal(k3, (h, d), jnp.float32),
        })
    # Rmapping / InstanceNorm / Highway params are unused on this config path
    # (Rmode != 'rmapping', instance_normalization=False, highway_flag=False).
    return {"layers": layers}


@jax.jit
def rgat_forward(params, x, r, A):
    n_nodes, d = x.shape
    num_layer = len(params["layers"])

    n_pad = _round_up(max(n_nodes, LANE), LANE)
    d_pad = _round_up(max(d, LANE), LANE)

    r = l2_normalize(r)          # self.l2norm
    x = l2_normalize(x)          # self.l2norm

    # lane-dense zero padding; padded nodes only self-attend (zero features).
    x_p = jnp.pad(x, ((0, n_pad - n_nodes), (0, d_pad - d)))
    r_p = jnp.pad(r, ((0, 0), (0, d_pad - d)))
    adj_bias = build_adj_bias(A, n_pad)

    x_cur = x_p
    x0 = x_p
    for i, layer in enumerate(params["layers"]):
        nh = layer["w"].shape[0]

        def pad_d(a):
            return jnp.pad(a, ((0, 0), (0, d_pad - a.shape[1])))

        w = pad_d(layer["w"])                          # (H, Dp)
        a_dst = pad_d(layer["a_dst"]) * w              # fold diag weight in
        a_src = pad_d(layer["a_src"]) * w
        a_rel = pad_d(layer["a_rel"])

        # tiny (N,H) einsums: per-head dst/src attention projections
        s_dst = (x_cur @ a_dst.T).T.reshape(nh, n_pad, 1)
        s_src = (x_cur @ a_src.T).T.reshape(nh, 1, n_pad)
        scale = (w * (1.0 / nh)).reshape(nh, 1, d_pad)  # diag w + head-mean

        rel = dense_rel_bias(r_p, a_rel, A, adj_bias, n_pad)   # bf16, masked

        # dropout with p=self.dropout is a no-op in eval mode
        x_cur = rgat_layer(x_cur.astype(jnp.bfloat16), scale, s_dst, s_src, rel)
        if i + 1 < num_layer:
            x_cur = jax.nn.elu(x_cur)
        if i == 0:
            x0 = x_cur

    x0 = x0[:n_nodes, :d]
    x_cur = x_cur[:n_nodes, :d]
    return jnp.concatenate([x0, x_cur], axis=1)          # (N, 2*D)


if __name__ == "__main__":
    key = jax.random.PRNGKey(0)

    # small shapes consistent with the module
    N, D, R, E = 16, 32, 8, 24
    n_units = [D, D, D]          # num_layer = 2, diag => f_in == f_out
    n_heads = [2, 2]

    key, kx, kr, ks, kd, krel, kp = jax.random.split(key, 7)
    x = jax.random.normal(kx, (N, D), jnp.float32)
    r = jax.random.normal(kr, (R, D), jnp.float32)
    A = jnp.stack([
        jax.random.randint(ks, (E,), 0, N),     # src entities
        jax.random.randint(krel, (E,), 0, R),   # relation ids
        jax.random.randint(kd, (E,), 0, N),     # dst entities
    ]).astype(jnp.int32)                        # (3, E)

    params = init_params(kp, n_units, n_heads)

    out = rgat_forward(params, x, r, A)
    out = jax.block_until_ready(out)
    assert out.shape == (N, 2 * D), out.shape
    assert bool(jnp.all(jnp.isfinite(out)))
    print("KERNEL_OK")
</pallas_src>

<mosaic_0001>
module attributes {stable_mosaic.version = 11 : i64} {
  func.func @rgat_layer_kernel(%arg0: i32, %arg1: i32, %arg2: memref<128x128xbf16, #tpu.memory_space<vmem>>, %arg3: memref<1x1x128xf32, #tpu.memory_space<vmem>>, %arg4: memref<1x128x1xf32, #tpu.memory_space<vmem>>, %arg5: memref<1x1x128xf32, #tpu.memory_space<vmem>>, %arg6: memref<1x128x128xbf16, #tpu.memory_space<vmem>>, %arg7: memref<128x128xf32, #tpu.memory_space<vmem>>) attributes {dimension_semantics = [#tpu.dimension_semantics<parallel>, #tpu.dimension_semantics<arbitrary>], iteration_bounds = array<i64: 1, 2>, scalar_prefetch = 0 : i64, scratch_operands = 0 : i64, tpu.core_type = #tpu.core_type<tc>, window_params = [{pipeline_mode = #tpu.pipeline_mode<synchronous>, transform_indices = @transform_0, window_bounds = array<i64: 128, 128>}, {transform_indices = @transform_1, window_bounds = array<i64: 1, 1, 128>}, {transform_indices = @transform_2, window_bounds = array<i64: 1, 128, 1>}, {transform_indices = @transform_3, window_bounds = array<i64: 1, 1, 128>}, {transform_indices = @transform_4, window_bounds = array<i64: 1, 128, 128>}, {transform_indices = @transform_5, window_bounds = array<i64: 128, 128>}]} {
    %c0 = arith.constant 0 : index
    %c0_0 = arith.constant 0 : index
    %c0_1 = arith.constant 0 : index
    %0 = vector.load %arg4[%c0, %c0_0, %c0_1] : memref<1x128x1xf32, #tpu.memory_space<vmem>>, vector<1x128x1xf32>
    %1 = vector.shape_cast %0 : vector<1x128x1xf32> to vector<128x1xf32>
    %c0_2 = arith.constant 0 : index
    %c0_3 = arith.constant 0 : index
    %c0_4 = arith.constant 0 : index
    %2 = vector.load %arg5[%c0_2, %c0_3, %c0_4] : memref<1x1x128xf32, #tpu.memory_space<vmem>>, vector<1x1x128xf32>
    %3 = vector.shape_cast %2 : vector<1x1x128xf32> to vector<1x128xf32>
    %4 = vector.broadcast %1 : vector<128x1xf32> to vector<128x128xf32>
    %5 = vector.broadcast %3 : vector<1x128xf32> to vector<128x128xf32>
    %6 = arith.addf %4, %5 : vector<128x128xf32>
    %c0_5 = arith.constant 0 : index
    %c0_6 = arith.constant 0 : index
    %c0_7 = arith.constant 0 : index
    %7 = vector.load %arg6[%c0_5, %c0_6, %c0_7] : memref<1x128x128xbf16, #tpu.memory_space<vmem>>, vector<1x128x128xbf16>
    %8 = vector.shape_cast %7 : vector<1x128x128xbf16> to vector<128x128xbf16>
    %9 = arith.extf %8 : vector<128x128xbf16> to vector<128x128xf32>
    %10 = arith.addf %6, %9 : vector<128x128xf32>
    %cst = arith.constant 2.000000e-01 : f32
    %11 = vector.broadcast %cst : f32 to vector<128x128xf32>
    %12 = arith.mulf %11, %10 : vector<128x128xf32>
    %13 = arith.maximumf %10, %12 : vector<128x128xf32>
    %cst_8 = arith.constant dense<0xFF800000> : vector<128xf32>
    %14 = vector.multi_reduction <maximumf>, %13, %cst_8 [1] : vector<128x128xf32> to vector<128xf32>
    %15 = vector.shape_cast %14 : vector<128xf32> to vector<128x1xf32>
    %16 = vector.broadcast %15 : vector<128x1xf32> to vector<128x128xf32>
    %17 = arith.subf %13, %16 : vector<128x128xf32>
    %18 = math.exp %17 : vector<128x128xf32>
    %cst_9 = arith.constant dense<0.000000e+00> : vector<128xf32>
    %19 = vector.multi_reduction <add>, %18, %cst_9 [1] : vector<128x128xf32> to vector<128xf32>
    %20 = vector.shape_cast %19 : vector<128xf32> to vector<128x1xf32>
    %21 = arith.truncf %18 : vector<128x128xf32> to vector<128x128xbf16>
    %c0_10 = arith.constant 0 : index
    %c0_11 = arith.constant 0 : index
    %22 = vector.load %arg2[%c0_10, %c0_11] : memref<128x128xbf16, #tpu.memory_space<vmem>>, vector<128x128xbf16>
    %cst_12 = arith.constant dense<0.000000e+00> : vector<128x128xf32>
    %23 = tpu.matmul %21, %22, %cst_12 {dimension_numbers = #tpu.dot_dimension_numbers<[1], [0], [0], [1], [0, 0, 1, 1], [], []>} : vector<128x128xbf16>, vector<128x128xbf16>, vector<128x128xf32> -> vector<128x128xf32>
    %24 = tpu.reciprocal %20 {approx = true} : vector<128x1xf32> -> vector<128x1xf32>
    %25 = vector.broadcast %24 : vector<128x1xf32> to vector<128x128xf32>
    %26 = arith.mulf %23, %25 : vector<128x128xf32>
    %c0_13 = arith.constant 0 : index
    %c0_14 = arith.constant 0 : index
    %c0_15 = arith.constant 0 : index
    %27 = vector.load %arg3[%c0_13, %c0_14, %c0_15] : memref<1x1x128xf32, #tpu.memory_space<vmem>>, vector<1x1x128xf32>
    %28 = vector.shape_cast %27 : vector<1x1x128xf32> to vector<1x128xf32>
    %29 = vector.broadcast %28 : vector<1x128xf32> to vector<128x128xf32>
    %30 = arith.mulf %26, %29 : vector<128x128xf32>
    %c0_i32 = arith.constant 0 : i32
    %31 = arith.cmpi eq, %arg1, %c0_i32 : i32
    %32 = arith.extui %31 : i1 to i32
    %c0_i32_16 = arith.constant 0 : i32
    %33 = arith.cmpi ne, %32, %c0_i32_16 : i32
    scf.if %33 {
      %c0_19 = arith.constant 0 : index
      %c0_20 = arith.constant 0 : index
      %37 = vector.load %arg7[%c0_19, %c0_20] : memref<128x128xf32, #tpu.memory_space<vmem>>, vector<128x128xf32>
      tpu.vector_store %arg7[%c0_19, %c0_20], %30 {strides = array<i32>} : memref<128x128xf32, #tpu.memory_space<vmem>>, vector<128x128xf32>,
    } else {
    }
    %c0_i32_17 = arith.constant 0 : i32
    %34 = arith.cmpi sgt, %arg1, %c0_i32_17 : i32
    %35 = arith.extui %34 : i1 to i32
    %c0_i32_18 = arith.constant 0 : i32
    %36 = arith.cmpi ne, %35, %c0_i32_18 : i32
    scf.if %36 {
      %c0_19 = arith.constant 0 : index
      %c0_20 = arith.constant 0 : index
      %37 = vector.load %arg7[%c0_19, %c0_20] : memref<128x128xf32, #tpu.memory_space<vmem>>, vector<128x128xf32>
      %38 = arith.addf %37, %30 : vector<128x128xf32>
      %c0_21 = arith.constant 0 : index
      %c0_22 = arith.constant 0 : index
      %39 = vector.load %arg7[%c0_21, %c0_22] : memref<128x128xf32, #tpu.memory_space<vmem>>, vector<128x128xf32>
      tpu.vector_store %arg7[%c0_21, %c0_22], %38 {strides = array<i32>} : memref<128x128xf32, #tpu.memory_space<vmem>>, vector<128x128xf32>,
    } else {
    }
    return
  }
  func.func @transform_0(%arg0: i32, %arg1: i32) -> (i32, i32) {
    %c0_i32 = arith.constant 0 : i32
    %c0_i32_0 = arith.constant 0 : i32
    %c0_i32_1 = arith.constant 0 : i32
    return %c0_i32, %c0_i32_0 : i32, i32
  }
  func.func @transform_1(%arg0: i32, %arg1: i32) -> (i32, i32, i32) {
    %c0_i32 = arith.constant 0 : i32
    %c0_i32_0 = arith.constant 0 : i32
    %c0_i32_1 = arith.constant 0 : i32
    return %arg1, %c0_i32, %c0_i32_0 : i32, i32, i32
  }
  func.func @transform_2(%arg0: i32, %arg1: i32) -> (i32, i32, i32) {
    %c0_i32 = arith.constant 0 : i32
    %c0_i32_0 = arith.constant 0 : i32
    return %arg1, %arg0, %c0_i32 : i32, i32, i32
  }
  func.func @transform_3(%arg0: i32, %arg1: i32) -> (i32, i32, i32) {
    %c0_i32 = arith.constant 0 : i32
    %c0_i32_0 = arith.constant 0 : i32
    %c0_i32_1 = arith.constant 0 : i32
    return %arg1, %c0_i32, %c0_i32_0 : i32, i32, i32
  }
  func.func @transform_4(%arg0: i32, %arg1: i32) -> (i32, i32, i32) {
    %c0_i32 = arith.constant 0 : i32
    %c0_i32_0 = arith.constant 0 : i32
    return %arg1, %arg0, %c0_i32 : i32, i32, i32
  }
  func.func @transform_5(%arg0: i32, %arg1: i32) -> (i32, i32) {
    %c0_i32 = arith.constant 0 : i32
    %c0_i32_0 = arith.constant 0 : i32
    return %arg0, %c0_i32 : i32, i32
  }
}

</mosaic_0001>

<bundles_post_ra>
// kernel: rgat_forward.2
= control target key start
LH: loop header
LB: loop body
LE: loop exit
PB: predicated region body
PF: predicated region fallthrough
CT: control target
= control target key end

     0   :  { %s1313_s18 = smov 0   ;;  %s1315_s19 = smov 0   ;;  %s1690_s0 = inlined_call_operand.vmem [shape: bf16[128,128], index: 0, kind: input, shape index: {}]   ;;  %s1691_s1 = inlined_call_operand.vmem [shape: f32[2,1,128], index: 1, kind: input, shape index: {}]   ;;  %s1692_s2 = inlined_call_operand.vmem [shape: f32[2,128,1], index: 2, kind: input, shape index: {}]   ;;  %s1693_s3 = inlined_call_operand.vmem [shape: f32[2,1,128], index: 3, kind: input, shape index: {}]   ;;  %s1694_s4 = inlined_call_operand.vmem [shape: bf16[2,128,128], index: 4, kind: input, shape index: {}]   ;;  %s1695_s5 = inlined_call_operand.vmem [shape: f32[128,128], index: 5, kind: output, shape index: {}]  }
   0x1   :  { %s1317_s20 = smov 0  }
   0x2 LB: > { %s24_s21 = sadd.s32 1, %s1276_s19  ;;  %p1033_p0 = scmp.ge.s32.totalorder %s1280_s20, 1  ;;  %s1280_s20 = sphi %s1317_s20, %s15_s20   ;;  %s1276_s19 = sphi %s1315_s19, %s1697_s19   ;;  %s1272_s18 = sphi %s1313_s18, %s1696_s18  }
   0x3   : > { %p25_p1 = scmp.ge.s32.totalorder %s24_s21, 2  ;;  %p239_p2 = scmp.lt.s32.totalorder %s1280_s20, 3 }
   0x5   : > { %s1699_s21 = smov (%p25_p1, %s24_s21), 0  ;;  %p240_p3 = pnand %p1033_p0, %p239_p2 }
   0x6   : > { %p286_p4 = scmp.lt.s32.totalorder (!%p240_p3), %s1272_s18, 1  ;;  %p1048_p5 = scmp.ne.s32.totalorder (!%p240_p3), %s1272_s18, 0 }
   0x7   : > { %243 = sbr.rel (%p240_p3) target bundleno = 568 (0x238), region = 40 }
   0xc   : > { %v1282_v0 = vmov 0   ;;  %s1335_s22 = scalar_select %p286_p4, %s1272_s18, 1 }
   0xd   : > { %1185 = vset.pattern.permute.xlu1 %v1282_v0  ;;  %1184 = vset.pattern.permute.xlu0 %v1282_v0 }
   0xe   : > { %s1054_s23 = sshll.u32 %s1335_s22, 7  ;;  %s1055_s27 = sshll.u32 %s1335_s22, 6 }
   0xf   : > { %s297_s26 = scalar_lea.vmem %s1692_s2, %s1054_s23  ;;  %s1345_s30 = scalar_lea.vmem %s1694_s4, %s1055_s27 }
  0x10   : > { %v327_v1 = vld [vmem:[%s297_s26 + $0x40] sm:$0xff]  ;;  %v328_v3 = vld [vmem:[%s297_s26 + $0x48] sm:$0xff]  ;;  %v322_v5 = vld [vmem:[%s297_s26 + $0x18] sm:$0xff]  ;;  %s301_s8 = scalar_lea.vmem %s1693_s3, %s1335_s22  ;;  %s288_s7 = scalar_lea.vmem %s1691_s1, %s1335_s22 }
  0x11   : > { %v319_v2 = vld [vmem:[%s297_s26] sm:$0xff]  ;;  %378 = vperm.xlu1 %1185, %v327_v1   ;;  %v320_v4 = vld [vmem:[%s297_s26 + $0x8] sm:$0xff]  ;;  %v321_v6 = vld [vmem:[%s297_s26 + $0x10] sm:$0xff] }
  0x12   : > { %338 = vperm.xlu0 %1184, %v319_v2   ;;  %v330_v7 = vld [vmem:[%s297_s26 + $0x58] sm:$0xff]  ;;  %v329_v8 = vld [vmem:[%s297_s26 + $0x50] sm:$0xff]  ;;  %v324_v9 = vld [vmem:[%s297_s26 + $0x28] sm:$0xff] }
  0x13   : > { %v323_v10 = vld [vmem:[%s297_s26 + $0x20] sm:$0xff]  ;;  %v332_v11 = vld [vmem:[%s297_s26 + $0x68] sm:$0xff]  ;;  %v326_v13 = vld [vmem:[%s297_s26 + $0x38] sm:$0xff] }
  0x14   : > { %v331_v12 = vld [vmem:[%s297_s26 + $0x60] sm:$0xff]  ;;  %v325_v14 = vld [vmem:[%s297_s26 + $0x30] sm:$0xff]  ;;  %v334_v15 = vld [vmem:[%s297_s26 + $0x78] sm:$0xff] }
  0x15   : > { %383 = vperm.xlu1 %1185, %v328_v3   ;;  %v333_v16 = vld [vmem:[%s297_s26 + $0x70] sm:$0xff]  ;;  %v1091_v17 = vld [vmem:[%s1345_s30 + $0x20] sm:$0xff]   ;;  %v1088_v30 = vld [vmem:[%s1345_s30 + $0x8] sm:$0xff]  }
  0x16   : > { %343 = vperm.xlu0 %1184, %v320_v4   ;;  %v1057_v18 = vld [vmem:[%s1345_s30] sm:$0xff]   ;;  %v1074_v20 = vunpack.c.l.bf16 %v1091_v17  ;;  %v1075_v28 = vunpack.c.h.bf16 %v1091_v17  ;;  %v1063_v36 = vunpack.c.h.bf16 %v1088_v30  ;;  %v1062_v37 = vunpack.c.l.bf16 %v1088_v30  ;;  %v1092_v41 = vld [vmem:[%s1345_s30 + $0x28] sm:$0xff]   ;;  %v1089_v55 = vld [vmem:[%s1345_s30 + $0x10] sm:$0xff]  }
  0x17   : > { %v1353_v19 = vld [vmem:[%s301_s8] ss:$0 sm:$0xff]  ;;  %v1058_v21 = vunpack.c.l.bf16 %v1057_v18  ;;  %v1059_v29 = vunpack.c.h.bf16 %v1057_v18  ;;  %v1079_v48 = vunpack.c.h.bf16 %v1092_v41  ;;  %v1078_v49 = vunpack.c.l.bf16 %v1092_v41  ;;  %v1093_v3 = vld [vmem:[%s1345_s30 + $0x30] sm:$0xff]   ;;  %v1090_v18 = vld [vmem:[%s1345_s30 + $0x18] sm:$0xff]  }
  0x18   : > { %v1067_v61 = vunpack.c.h.bf16 %v1089_v55  ;;  %v1066_v62 = vunpack.c.l.bf16 %v1089_v55 }
  0x19   : > { %353 = vperm.xlu1 %1185, %v322_v5  }
  0x1a   : > { %348 = vperm.xlu0 %1184, %v321_v6  }
  0x1d   : > { %393 = vperm.xlu1 %1185, %v330_v7  }
  0x1e   : > { %388 = vperm.xlu0 %1184, %v329_v8  }
  0x21   : > { %363 = vperm.xlu1 %1185, %v324_v9  }
  0x22   : > { %358 = vperm.xlu0 %1184, %v323_v10   ;;  %v1186_v10 = vld [vmem:[%s1690_s0 + $0x38] sm:$0xff]  }
  0x23   : > { %1111 = vmatprep.subr.bf16.mxu0 %v1186_v10  ;;  %1143 = vmatprep.subr.bf16.mxu1 %v1186_v10 }
  0x24   : > { %1112 = vmatpush3.bf16.msra.mxu0 %v1186_v10  ;;  %1151 = vmatpush3.bf16.msra.mxu1 %v1186_v10 }
  0x25   : > { %403 = vperm.xlu1 %1185, %v332_v11   ;;  %v1083_v11 = vunpack.c.h.bf16 %v1093_v3 }
  0x26   : > { %398 = vperm.xlu0 %1184, %v331_v12   ;;  %v1082_v12 = vunpack.c.l.bf16 %v1093_v3  ;;  %v1191_v3 = vld [vmem:[%s1690_s0 + $0x10] sm:$0xff]  }
  0x29   : > { %373 = vperm.xlu1 %1185, %v326_v13  }
  0x2a   : > { %368 = vperm.xlu0 %1184, %v325_v14  }
  0x2d   : > { %413 = vperm.xlu1 %1185, %v334_v15  }
  0x2e   : > { %408 = vperm.xlu0 %1184, %v333_v16  }
  0x8c   : > { %v379_v22 = vpop.permute.xlu1 %378 }
  0x8d   : > { %v339_v23 = vpop.permute.xlu0 %338  ;;  %v430_v24 = vadd.f32 %v1353_v19, %v379_v22 }
  0x8e   : > { %v422_v25 = vadd.f32 %v1353_v19, %v339_v23 }
  0x8f   : > { %v478_v26 = vadd.f32 %v1074_v20, %v430_v24 }
  0x90   : > { %v470_v27 = vadd.f32 %v1058_v21, %v422_v25  ;;  %v384_v31 = vpop.permute.xlu1 %383  ;;  %v1071_v25 = vunpack.c.h.bf16 %v1090_v18 }
  0x91   : > { %v344_v32 = vpop.permute.xlu0 %343  ;;  %v431_v33 = vadd.f32 %v1353_v19, %v384_v31  ;;  %v494_v42 = vmul.f32 0.2, %v478_v26 }
  0x92   : > { %v423_v34 = vadd.f32 %v1353_v19, %v344_v32  ;;  %v486_v35 = vmul.f32 0.2, %v470_v27  ;;  %v1094_v32 = vld [vmem:[%s1345_s30 + $0x38] sm:$0xff]  }
  0x93   : > { %v479_v38 = vadd.f32 %v1075_v28, %v431_v33  ;;  %v1366_v53 = vmax.f32 %v478_v26, %v494_v42  ;;  %v1070_v26 = vunpack.c.l.bf16 %v1090_v18  ;;  %v1187_v28 = vld [vmem:[%s1690_s0 + $0x30] sm:$0xff]   ;;  %v1086_v41 = vunpack.c.l.bf16 %v1094_v32 }
  0x94   : > { %v471_v39 = vadd.f32 %v1059_v29, %v423_v34  ;;  %v1360_v40 = vmax.f32 %v470_v27, %v486_v35  ;;  %v354_v43 = vpop.permute.xlu1 %353  ;;  %1113 = vmatprep.subr.bf16.mxu0 %v1187_v28  ;;  %1144 = vmatprep.subr.bf16.mxu1 %v1187_v28 }
  0x95   : > { %v349_v44 = vpop.permute.xlu0 %348  ;;  %v425_v45 = vadd.f32 %v1353_v19, %v354_v43  ;;  %v495_v50 = vmul.f32 0.2, %v479_v38  ;;  %1114 = vmatpush3.bf16.msra.mxu0 %v1187_v28  ;;  %v1188_v43 = vld [vmem:[%s1690_s0 + $0x28] sm:$0xff]   ;;  %1152 = vmatpush3.bf16.msra.mxu1 %v1187_v28 }
  0x96   : > { %v424_v46 = vadd.f32 %v1353_v19, %v349_v44  ;;  %518 = vmax.xlane.f32.xlu0 %v1360_v40  ;;  %v487_v47 = vmul.f32 0.2, %v471_v39  ;;  %1115 = vmatprep.subr.bf16.mxu0 %v1188_v43 }
  0x97   : > { %v473_v51 = vadd.f32 %v1063_v36, %v425_v45  ;;  %v1375_v63 = vmax.f32 %v479_v38, %v495_v50  ;;  %1145 = vmatprep.subr.bf16.mxu1 %v1188_v43 }
  0x98   : > { %v472_v52 = vadd.f32 %v1062_v37, %v424_v46  ;;  %v1368_v54 = vmax.f32 %v471_v39, %v487_v47  ;;  %v394_v56 = vpop.permute.xlu1 %393  ;;  %v1087_v39 = vunpack.c.h.bf16 %v1094_v32 }
  0x99   : > { %v389_v57 = vpop.permute.xlu0 %388  ;;  %v433_v58 = vadd.f32 %v1353_v19, %v394_v56  ;;  %v489_v4 = vmul.f32 0.2, %v473_v51  ;;  %1116 = vmatpush3.bf16.msra.mxu0 %v1188_v43  ;;  %v1189_v56 = vld [vmem:[%s1690_s0 + $0x20] sm:$0xff]   ;;  %1153 = vmatpush3.bf16.msra.mxu1 %v1188_v43 }
  0x9a   : > { %v432_v59 = vadd.f32 %v1353_v19, %v389_v57  ;;  %534 = vmax.xlane.f32.xlu0 %v1366_v53  ;;  %520 = vmax.xlane.f32.xlu1 %v1368_v54  ;;  %v488_v60 = vmul.f32 0.2, %v472_v52 }
  0x9b   : > { %v481_v0 = vadd.f32 %v1079_v48, %v433_v58  ;;  %v1387_v16 = vmax.f32 %v473_v51, %v489_v4  ;;  %1117 = vmatprep.subr.bf16.mxu0 %v1189_v56  ;;  %1146 = vmatprep.subr.bf16.mxu1 %v1189_v56 }
  0x9c   : > { %v480_v1 = vadd.f32 %v1078_v49, %v432_v59  ;;  %v1377_v2 = vmax.f32 %v472_v52, %v488_v60  ;;  %v364_v5 = vpop.permute.xlu1 %363 }
  0x9d   : > { %v359_v6 = vpop.permute.xlu0 %358  ;;  %v427_v7 = vadd.f32 %v1353_v19, %v364_v5  ;;  %v497_v13 = vmul.f32 0.2, %v481_v0  ;;  %1118 = vmatpush3.bf16.msra.mxu0 %v1189_v56  ;;  %1154 = vmatpush3.bf16.msra.mxu1 %v1189_v56  ;;  %v1192_v5 = vld [vmem:[%s1690_s0 + $0x8] sm:$0xff]  }
  0x9e   : > { %v426_v8 = vadd.f32 %v1353_v19, %v359_v6  ;;  %536 = vmax.xlane.f32.xlu0 %v1375_v63  ;;  %522 = vmax.xlane.f32.xlu1 %v1377_v2  ;;  %v496_v9 = vmul.f32 0.2, %v480_v1  ;;  %v1193_v6 = vld [vmem:[%s1690_s0] sm:$0xff]  }
  0x9f   : > { %v475_v14 = vadd.f32 %v1067_v61, %v427_v7  ;;  %v1396_v27 = vmax.f32 %v481_v0, %v497_v13  ;;  %v1190_v61 = vld [vmem:[%s1690_s0 + $0x18] sm:$0xff]  }
  0xa0   : > { %v474_v15 = vadd.f32 %v1066_v62, %v426_v8  ;;  %v1389_v17 = vmax.f32 %v480_v1, %v496_v9  ;;  %v404_v20 = vpop.permute.xlu1 %403  ;;  %1119 = vmatprep.subr.bf16.mxu0 %v1190_v61  ;;  %1147 = vmatprep.subr.bf16.mxu1 %v1190_v61 }
  0xa1   : > { %v399_v21 = vpop.permute.xlu0 %398  ;;  %v435_v22 = vadd.f32 %v1353_v19, %v404_v20  ;;  %v491_v33 = vmul.f32 0.2, %v475_v14  ;;  %1120 = vmatpush3.bf16.msra.mxu0 %v1190_v61  ;;  %1155 = vmatpush3.bf16.msra.mxu1 %v1190_v61 }
  0xa2   : > { %v434_v23 = vadd.f32 %v1353_v19, %v399_v21  ;;  %524 = vmax.xlane.f32.xlu0 %v1387_v16  ;;  %538 = vmax.xlane.f32.xlu1 %v1389_v17  ;;  %v490_v24 = vmul.f32 0.2, %v474_v15 }
  0xa3   : > { %v483_v29 = vadd.f32 %v1083_v11, %v435_v22  ;;  %v1411_v46 = vmax.f32 %v475_v14, %v491_v33  ;;  %1121 = vmatprep.subr.bf16.mxu0 %v1191_v3  ;;  %1148 = vmatprep.subr.bf16.mxu1 %v1191_v3 }
  0xa4   : > { %v482_v30 = vadd.f32 %v1082_v12, %v434_v23  ;;  %v1401_v31 = vmax.f32 %v474_v15, %v490_v24  ;;  %v374_v34 = vpop.permute.xlu1 %373 }
  0xa5   : > { %v369_v35 = vpop.permute.xlu0 %368  ;;  %v429_v36 = vadd.f32 %v1353_v19, %v374_v34  ;;  %v499_v42 = vmul.f32 0.2, %v483_v29  ;;  %1122 = vmatpush3.bf16.msra.mxu0 %v1191_v3  ;;  %1156 = vmatpush3.bf16.msra.mxu1 %v1191_v3 }
  0xa6   : > { %v428_v37 = vadd.f32 %v1353_v19, %v369_v35  ;;  %540 = vmax.xlane.f32.xlu0 %v1396_v27  ;;  %526 = vmax.xlane.f32.xlu1 %v1401_v31  ;;  %v498_v38 = vmul.f32 0.2, %v482_v30 }
  0xa7   : > { %v477_v44 = vadd.f32 %v1071_v25, %v429_v36  ;;  %v1419_v55 = vmax.f32 %v483_v29, %v499_v42  ;;  %1123 = vmatprep.subr.bf16.mxu0 %v1192_v5  ;;  %1149 = vmatprep.subr.bf16.mxu1 %v1192_v5 }
  0xa8   : > { %v476_v45 = vadd.f32 %v1070_v26, %v428_v37  ;;  %v1413_v47 = vmax.f32 %v482_v30, %v498_v38  ;;  %v414_v48 = vpop.permute.xlu1 %413 }
  0xa9   : > { %v409_v49 = vpop.permute.xlu0 %408  ;;  %v437_v50 = vadd.f32 %v1353_v19, %v414_v48  ;;  %v493_v60 = vmul.f32 0.2, %v477_v44  ;;  %1124 = vmatpush3.bf16.msra.mxu0 %v1192_v5  ;;  %1157 = vmatpush3.bf16.msra.mxu1 %v1192_v5 }
  0xaa   : > { %v436_v51 = vadd.f32 %v1353_v19, %v409_v49  ;;  %528 = vmax.xlane.f32.xlu0 %v1411_v46  ;;  %542 = vmax.xlane.f32.xlu1 %v1413_v47  ;;  %v492_v52 = vmul.f32 0.2, %v476_v45 }
  0xab   : > { %v485_v57 = vadd.f32 %v1087_v39, %v437_v50  ;;  %v1431_v62 = vmax.f32 %v477_v44, %v493_v60  ;;  %1125 = vmatprep.subr.bf16.mxu0 %v1193_v6  ;;  %1150 = vmatprep.subr.bf16.mxu1 %v1193_v6 }
  0xac   : > { %v484_v58 = vadd.f32 %v1086_v41, %v436_v51  ;;  %v1424_v59 = vmax.f32 %v476_v45, %v492_v52 }
  0xad   : > { %v501_v1 = vmul.f32 0.2, %v485_v57  ;;  %1126 = vmatpush3.bf16.msra.mxu0 %v1193_v6  ;;  %1158 = vmatpush3.bf16.msra.mxu1 %v1193_v6 }
  0xae   : > { %544 = vmax.xlane.f32.xlu0 %v1419_v55  ;;  %530 = vmax.xlane.f32.xlu1 %v1424_v59  ;;  %v500_v19 = vmul.f32 0.2, %v484_v58 }
  0xaf   : > { %v1440_v4 = vmax.f32 %v485_v57, %v501_v1 }
  0xb0   : > { %v1433_v0 = vmax.f32 %v484_v58, %v500_v19 }
  0xb2   : > { %532 = vmax.xlane.f32.xlu0 %v1431_v62  ;;  %546 = vmax.xlane.f32.xlu1 %v1433_v0 }
  0xb6   : > { %548 = vmax.xlane.f32.xlu0 %v1440_v4 }
 0x11f   : > { %v519_v7 = vpop.xlane.xlu0 %518 }
 0x120   : > { %v550_v8 = vsub.f32 %v1360_v40, %v519_v7 }
 0x122   : > { %v566_v9 = vmul.f32 1.442695, %v550_v8 }
 0x123   : > { %v521_v10 = vpop.xlane.xlu1 %520  ;;  %v535_v11 = vpop.xlane.xlu0 %534 }
 0x124   : > { %1194 = vpow2.f32 %v566_v9  ;;  %v551_v12 = vsub.f32 %v1368_v54, %v521_v10  ;;  %v558_v13 = vsub.f32 %v1366_v53, %v535_v11 }
 0x126   : > { %v568_v14 = vmul.f32 1.442695, %v551_v12  ;;  %v582_v15 = vmul.f32 1.442695, %v558_v13 }
 0x127   : > { %v523_v18 = vpop.xlane.xlu1 %522  ;;  %v537_v20 = vpop.xlane.xlu0 %536 }
 0x128   : > { %1196 = vpow2.f32 %v568_v14  ;;  %v552_v21 = vsub.f32 %v1377_v2, %v523_v18  ;;  %v559_v22 = vsub.f32 %v1375_v63, %v537_v20 }
 0x129   : > { %1198 = vpow2.f32 %v582_v15 }
 0x12a   : > { %v570_v23 = vmul.f32 1.442695, %v552_v21  ;;  %v584_v24 = vmul.f32 1.442695, %v559_v22 }
 0x12b   : > { %v539_v40 = vpop.xlane.xlu1 %538  ;;  %v525_v25 = vpop.xlane.xlu0 %524 }
 0x12c   : > { %1200 = vpow2.f32 %v570_v23  ;;  %v560_v26 = vsub.f32 %v1389_v17, %v539_v40  ;;  %v553_v54 = vsub.f32 %v1387_v16, %v525_v25 }
 0x12d   : > { %1202 = vpow2.f32 %v584_v24 }
 0x12e   : > { %v572_v53 = vmul.f32 1.442695, %v553_v54  ;;  %v586_v28 = vmul.f32 1.442695, %v560_v26 }
 0x12f   : > { %v527_v29 = vpop.xlane.xlu1 %526  ;;  %v541_v30 = vpop.xlane.xlu0 %540 }
 0x130   : > { %v554_v32 = vsub.f32 %v1401_v31, %v527_v29  ;;  %v561_v2 = vsub.f32 %v1396_v27, %v541_v30  ;;  %1204 = vpow2.f32 %v572_v53 }
 0x131   : > { %v1195_v63 = vpop.eup %1194  ;;  %1206 = vpow2.f32 %v586_v28 }
 0x132   : > { %v574_v33 = vmul.f32 1.442695, %v554_v32  ;;  %v588_v34 = vmul.f32 1.442695, %v561_v2  ;;  %598 = vadd.xlane.f32.xlu1 %v1195_v63  ;;  %v1469_v32 = vld [vmem:[%s288_s7] ss:$0 sm:$0xff] }
 0x133   : > { %v543_v35 = vpop.xlane.xlu1 %542  ;;  %v529_v36 = vpop.xlane.xlu0 %528 }
 0x134   : > { %1208 = vpow2.f32 %v574_v33  ;;  %v562_v16 = vsub.f32 %v1413_v47, %v543_v35  ;;  %v555_v17 = vsub.f32 %v1411_v46, %v529_v36 }
 0x135   : > { %v1197_v37 = vpop.eup %1196  ;;  %1210 = vpow2.f32 %v588_v34 }
 0x136   : > { %v576_v38 = vmul.f32 1.442695, %v555_v17  ;;  %600 = vadd.xlane.f32.xlu0 %v1197_v37  ;;  %v630_v31 = vpack.c.bf16 %v1197_v37, %v1195_v63  ;;  %v590_v39 = vmul.f32 1.442695, %v562_v16  ;;  %v1199_v42 = vpop.eup %1198 }
 0x137   : > { %v531_v27 = vpop.xlane.xlu1 %530  ;;  %v545_v41 = vpop.xlane.xlu0 %544 }
 0x138   : > { %v556_v43 = vsub.f32 %v1424_v59, %v531_v27  ;;  %v563_v44 = vsub.f32 %v1419_v55, %v545_v41  ;;  %1127 = vmatprep.mubr.bf16.mxu0 %v630_v31  ;;  %1212 = vpow2.f32 %v576_v38 }
 0x139   : > { %v1201_v45 = vpop.eup %1200  ;;  %1214 = vpow2.f32 %v590_v39 }
 0x13a   : > { %v1203_v48 = vpop.eup %1202  ;;  %v578_v47 = vmul.f32 1.442695, %v556_v43  ;;  %v592_v49 = vmul.f32 1.442695, %v563_v44  ;;  %602 = vadd.xlane.f32.xlu1 %v1201_v45 }
 0x13b   : > { %v547_v46 = vpop.xlane.xlu1 %546  ;;  %v533_v50 = vpop.xlane.xlu0 %532  ;;  %v634_v51 = vpack.c.bf16 %v1203_v48, %v1199_v42 }
 0x13c   : > { %1216 = vpow2.f32 %v578_v47  ;;  %v564_v52 = vsub.f32 %v1433_v0, %v547_v46  ;;  %v557_v56 = vsub.f32 %v1431_v62, %v533_v50 }
 0x13d   : > { %1218 = vpow2.f32 %v592_v49  ;;  %1135 = vmatprep.mubr.bf16.mxu1 %v634_v51  ;;  %v1205_v57 = vpop.eup %1204 }
 0x13e   : > { %v580_v55 = vmul.f32 1.442695, %v557_v56  ;;  %v594_v58 = vmul.f32 1.442695, %v564_v52  ;;  %604 = vadd.xlane.f32.xlu0 %v1205_v57  ;;  %v631_v60 = vpack.c.bf16 %v1205_v57, %v1201_v45  ;;  %v1207_v19 = vpop.eup %1206 }
 0x13f   : > { %v549_v59 = vpop.xlane.xlu0 %548 }
 0x140   : > { %v565_v61 = vsub.f32 %v1440_v4, %v549_v59  ;;  %1220 = vpow2.f32 %v580_v55  ;;  %1128 = vmatmul.mubr.bf16.vlgmr.msra.gmra.mxu0 %v631_v60 }
 0x141   : > { %v1209_v1 = vpop.eup %1208  ;;  %1222 = vpow2.f32 %v594_v58 }
 0x142   : > { %v1211_v3 = vpop.eup %1210  ;;  %v596_v5 = vmul.f32 1.442695, %v565_v61  ;;  %606 = vadd.xlane.f32.xlu1 %v1209_v1 }
 0x143   : > { %v635_v0 = vpack.c.bf16 %v1211_v3, %v1207_v19 }
 0x144   : > { %1224 = vpow2.f32 %v596_v5 }
 0x145   : > { %1136 = vmatmul.mubr.bf16.vlgmr.msra.gmra.mxu1 %v635_v0  ;;  %v1213_v62 = vpop.eup %1212 }
 0x146   : > { %608 = vadd.xlane.f32.xlu0 %v1213_v62  ;;  %v632_v6 = vpack.c.bf16 %v1213_v62, %v1209_v1  ;;  %v1215_v7 = vpop.eup %1214 }
 0x148   : > { %1131 = vmatprep.mubr.bf16.mxu0 %v632_v6 }
 0x149   : > { %v1217_v8 = vpop.eup %1216 }
 0x14a   : > { %v1219_v9 = vpop.eup %1218  ;;  %610 = vadd.xlane.f32.xlu1 %v1217_v8 }
 0x14b   : > { %v636_v10 = vpack.c.bf16 %v1219_v9, %v1215_v7 }
 0x14d   : > { %1139 = vmatprep.mubr.bf16.mxu1 %v636_v10  ;;  %v1221_v4 = vpop.eup %1220 }
 0x14e   : > { %614 = vadd.xlane.f32.xlu1 %v1199_v42  ;;  %612 = vadd.xlane.f32.xlu0 %v1221_v4  ;;  %v633_v11 = vpack.c.bf16 %v1221_v4, %v1217_v8  ;;  %v1223_v12 = vpop.eup %1222 }
 0x150   : > { %1132 = vmatmul.mubr.bf16.gmra.mxu0 %v633_v11 }
 0x151   : > { %v1225_v13 = vpop.eup %1224 }
 0x152   : > { %618 = vadd.xlane.f32.xlu1 %v1207_v19  ;;  %v637_v14 = vpack.c.bf16 %v1225_v13, %v1223_v12  ;;  %616 = vadd.xlane.f32.xlu0 %v1203_v48 }
 0x154   : > { %1140 = vmatmul.mubr.bf16.gmra.mxu1 %v637_v14 }
 0x156   : > { %622 = vadd.xlane.f32.xlu1 %v1215_v7  ;;  %620 = vadd.xlane.f32.xlu0 %v1211_v3 }
 0x15a   : > { %626 = vadd.xlane.f32.xlu1 %v1223_v12  ;;  %624 = vadd.xlane.f32.xlu0 %v1219_v9 }
 0x15e   : > { %628 = vadd.xlane.f32.xlu0 %v1225_v13 }
 0x1bb   : > { %v599_v15 = vpop.xlane.xlu1 %598 }
 0x1bf   : > { %v601_v18 = vpop.xlane.xlu0 %600 }
 0x1c3   : > { %v603_v20 = vpop.xlane.xlu1 %602 }
 0x1c4   : > { %1226 = vrcp.f32 %v603_v20 }
 0x1c5   : > { %1228 = vrcp.f32 %v599_v15 }
 0x1c7   : > { %v605_v21 = vpop.xlane.xlu0 %604 }
 0x1c8   : > { %1230 = vrcp.f32 %v605_v21 }
 0x1cb   : > { %v607_v22 = vpop.xlane.xlu1 %606 }
 0x1cf   : > { %v609_v23 = vpop.xlane.xlu0 %608 }
 0x1d1   : > { %v1227_v29 = vpop.eup %1226 }
 0x1d2   : > { %v1229_v33 = vpop.eup %1228 }
 0x1d3   : > { %v611_v24 = vpop.xlane.xlu1 %610 }
 0x1d5   : > { %v1231_v35 = vpop.eup %1230 }
 0x1d7   : > { %v613_v40 = vpop.xlane.xlu0 %612  ;;  %v615_v25 = vpop.xlane.xlu1 %614 }
 0x1db   : > { %v617_v26 = vpop.xlane.xlu0 %616  ;;  %v619_v54 = vpop.xlane.xlu1 %618 }
 0x1dc   : > { %1232 = vrcp.f32 %v619_v54 }
 0x1dd   : > { %1234 = vrcp.f32 %v601_v18 }
 0x1de   : > { %1236 = vrcp.f32 %v615_v25 }
 0x1df   : > { %v621_v53 = vpop.xlane.xlu0 %620  ;;  %v623_v28 = vpop.xlane.xlu1 %622 }
 0x1e0   : > { %1238 = vrcp.f32 %v621_v53 }
 0x1e1   : > { %1240 = vrcp.f32 %v617_v26 }
 0x1e2   : > { %1242 = vrcp.f32 %v611_v24 }
 0x1e3   : > { %v625_v2 = vpop.xlane.xlu0 %624  ;;  %v627_v36 = vpop.xlane.xlu1 %626  ;;  %1244 = vrcp.f32 %v607_v22 }
 0x1e4   : > { %1246 = vrcp.f32 %v613_v40 }
 0x1e5   : > { %1248 = vrcp.f32 %v627_v36 }
 0x1e6   : > { %1250 = vrcp.f32 %v623_v28 }
 0x1e7   : > { %v629_v48 = vpop.xlane.xlu0 %628  ;;  %1252 = vrcp.f32 %v609_v23 }
 0x1e8   : > { %1254 = vrcp.f32 %v629_v48 }
 0x1e9   : > { %v1233_v37 = vpop.eup %1232  ;;  %1256 = vrcp.f32 %v625_v2 }
 0x1ea   : > { %v1235_v39 = vpop.eup %1234 }
 0x1eb   : > { %v1237_v43 = vpop.eup %1236 }
 0x1ed   : > { %v1239_v51 = vpop.eup %1238 }
 0x1ee   : > { %v1241_v58 = vpop.eup %1240 }
 0x1ef   : > { %v1243_v1 = vpop.eup %1242 }
 0x1f0   : > { %v1245_v5 = vpop.eup %1244 }
 0x1f1   : > { %v1247_v62 = vpop.eup %1246 }
 0x1f2   : > { %v1249_v7 = vpop.eup %1248 }
 0x1f3   : > { %v1251_v12 = vpop.eup %1250 }
 0x1f4   : > { %v1253_v18 = vpop.eup %1252 }
 0x1f5   : > { %v1255_v23 = vpop.eup %1254 }
 0x1f6   : > { %v1257_v53 = vpop.eup %1256 }
 0x200   : > { %v1129_v30 = vpop.f32.mrf.mxu0 }
 0x201   : > { %v817_v63 = vmul.f32 %v1227_v29, %v1129_v30 }
 0x202   : > { %v736_v34 = vpop.f32.mrf.mxu0 }
 0x203   : > { %v1472_v16 = vmul.f32 %v1469_v32, %v817_v63  ;;  %v815_v17 = vmul.f32 %v1229_v33, %v736_v34 }
 0x204   : > { %v1130_v38 = vpop.f32.mrf.mxu0 }
 0x205   : > { %v1137_v31 = vpop.f32.mrf.mxu1  ;;  %v1475_v27 = vmul.f32 %v1469_v32, %v815_v17  ;;  %v818_v41 = vmul.f32 %v1231_v35, %v1130_v38 }
 0x206   : > { %v825_v42 = vmul.f32 %v1233_v37, %v1137_v31  ;;  %v739_v44 = vpop.f32.mrf.mxu0 }
 0x207   : > { %v768_v45 = vpop.f32.mrf.mxu1  ;;  %v1478_v47 = vmul.f32 %v1469_v32, %v818_v41  ;;  %v816_v46 = vmul.f32 %v1235_v39, %v739_v44 }
 0x208   : > { %v1481_v49 = vmul.f32 %v1469_v32, %v825_v42  ;;  %v823_v50 = vmul.f32 %v1237_v43, %v768_v45 }
 0x209   : > { %v1138_v52 = vpop.f32.mrf.mxu1  ;;  %v1484_v56 = vmul.f32 %v1469_v32, %v816_v46 }
 0x20a   : > { %v1487_v57 = vmul.f32 %v1469_v32, %v823_v50  ;;  %v826_v55 = vmul.f32 %v1239_v51, %v1138_v52 }
 0x20b   : > { %v771_v59 = vpop.f32.mrf.mxu1 }
 0x20c   : > { %v1490_v60 = vmul.f32 %v1469_v32, %v826_v55  ;;  %v824_v19 = vmul.f32 %v1241_v58, %v771_v59 }
 0x20e   : > { %v1493_v61 = vmul.f32 %v1469_v32, %v824_v19 }
 0x210   : > { %v1133_v3 = vpop.f32.mrf.mxu0 }
 0x211   : > { %v821_v0 = vmul.f32 %v1243_v1, %v1133_v3 }
 0x212   : > { %v752_v6 = vpop.f32.mrf.mxu0 }
 0x213   : > { %v1496_v8 = vmul.f32 %v1469_v32, %v821_v0  ;;  %v819_v9 = vmul.f32 %v1245_v5, %v752_v6 }
 0x214   : > { %v1141_v10 = vpop.f32.mrf.mxu1  ;;  %v1134_v4 = vpop.f32.mrf.mxu0 }
 0x215   : > { %v829_v11 = vmul.f32 %v1249_v7, %v1141_v10  ;;  %v842_v13 = vmul.f32 %v1469_v32, %v819_v9  ;;  %v822_v14 = vmul.f32 %v1247_v62, %v1134_v4 }
 0x216   : > { %v784_v15 = vpop.f32.mrf.mxu1  ;;  %v755_v21 = vpop.f32.mrf.mxu0 }
 0x217   : > { %v1500_v20 = vmul.f32 %v1469_v32, %v829_v11  ;;  %v827_v22 = vmul.f32 %v1251_v12, %v784_v15  ;;  %v845_v24 = vmul.f32 %v1469_v32, %v822_v14  ;;  %v820_v40 = vmul.f32 %v1253_v18, %v755_v21 }
 0x218   : > { %v1142_v25 = vpop.f32.mrf.mxu1 }
 0x219   : > { %v1504_v26 = vmul.f32 %v1469_v32, %v827_v22  ;;  %v830_v54 = vmul.f32 %v1255_v23, %v1142_v25  ;;  %v843_v28 = vmul.f32 %v1469_v32, %v820_v40  ;;  %857 = sbr.rel (%p1048_p5) target bundleno = 550 (0x226), region = 44 }
 0x21a   : > { %v787_v29 = vpop.f32.mrf.mxu1 }
 0x21b   : > { %v1508_v30 = vmul.f32 %v1469_v32, %v830_v54  ;;  %v828_v2 = vmul.f32 %v1257_v53, %v787_v29 }
 0x21d   : > { %v851_v63 = vmul.f32 %v1469_v32, %v828_v2 }
 0x21e   : > { %858 = vst [vmem:[%s1695_s5] sm:$0xff] %v1475_v27  ;;  %859 = vst [vmem:[%s1695_s5 + $0x8] sm:$0xff] %v1484_v56 }
 0x21f   : > { %860 = vst [vmem:[%s1695_s5 + $0x10] sm:$0xff] %v1472_v16  ;;  %861 = vst [vmem:[%s1695_s5 + $0x18] sm:$0xff] %v1478_v47 }
 0x220   : > { %862 = vst [vmem:[%s1695_s5 + $0x20] sm:$0xff] %v842_v13  ;;  %863 = vst [vmem:[%s1695_s5 + $0x28] sm:$0xff] %v843_v28 }
 0x221   : > { %864 = vst [vmem:[%s1695_s5 + $0x30] sm:$0xff] %v1496_v8  ;;  %865 = vst [vmem:[%s1695_s5 + $0x38] sm:$0xff] %v845_v24 }
 0x222   : > { %866 = vst [vmem:[%s1695_s5 + $0x40] sm:$0xff] %v1487_v57  ;;  %867 = vst [vmem:[%s1695_s5 + $0x48] sm:$0xff] %v1493_v61 }
 0x223   : > { %868 = vst [vmem:[%s1695_s5 + $0x50] sm:$0xff] %v1481_v49  ;;  %869 = vst [vmem:[%s1695_s5 + $0x58] sm:$0xff] %v1490_v60 }
 0x224   : > { %870 = vst [vmem:[%s1695_s5 + $0x60] sm:$0xff] %v1504_v26  ;;  %871 = vst [vmem:[%s1695_s5 + $0x68] sm:$0xff] %v851_v63 }
 0x225   : > { %872 = vst [vmem:[%s1695_s5 + $0x70] sm:$0xff] %v1500_v20  ;;  %873 = vst [vmem:[%s1695_s5 + $0x78] sm:$0xff] %v1508_v30 }
 0x226 PF: > { %p1049_p6 = scmp.le.s32.totalorder %s1272_s18, 0 }
 0x228   : > { %877 = sbr.rel (%p1049_p6) target bundleno = 568 (0x238), region = 48 }
 0x22d   : > { %v878_v32 = vld [vmem:[%s1695_s5] sm:$0xff]  ;;  %v879_v33 = vld [vmem:[%s1695_s5 + $0x8] sm:$0xff]  ;;  %v880_v34 = vld [vmem:[%s1695_s5 + $0x10] sm:$0xff] }
 0x22e   : > { %v894_v35 = vadd.f32 %v878_v32, %v1475_v27  ;;  %v895_v36 = vadd.f32 %v879_v33, %v1484_v56  ;;  %v896_v17 = vadd.f32 %v880_v34, %v1472_v16  ;;  %v881_v37 = vld [vmem:[%s1695_s5 + $0x18] sm:$0xff]  ;;  %v882_v38 = vld [vmem:[%s1695_s5 + $0x20] sm:$0xff]  ;;  %v883_v31 = vld [vmem:[%s1695_s5 + $0x28] sm:$0xff] }
 0x22f   : > { %v897_v39 = vadd.f32 %v881_v37, %v1478_v47  ;;  %v898_v41 = vadd.f32 %v882_v38, %v842_v13  ;;  %v899_v27 = vadd.f32 %v883_v31, %v843_v28  ;;  %v884_v16 = vld [vmem:[%s1695_s5 + $0x30] sm:$0xff]  ;;  %v885_v42 = vld [vmem:[%s1695_s5 + $0x38] sm:$0xff]  ;;  %v886_v43 = vld [vmem:[%s1695_s5 + $0x40] sm:$0xff] }
 0x230   : > { %910 = vst [vmem:[%s1695_s5] sm:$0xff] %v894_v35  ;;  %911 = vst [vmem:[%s1695_s5 + $0x8] sm:$0xff] %v895_v36  ;;  %v900_v44 = vadd.f32 %v884_v16, %v1496_v8  ;;  %v901_v45 = vadd.f32 %v885_v42, %v845_v24  ;;  %v902_v48 = vadd.f32 %v886_v43, %v1487_v57  ;;  %v887_v47 = vld [vmem:[%s1695_s5 + $0x48] sm:$0xff]  ;;  %v888_v46 = vld [vmem:[%s1695_s5 + $0x50] sm:$0xff] }
 0x231   : > { %912 = vst [vmem:[%s1695_s5 + $0x10] sm:$0xff] %v896_v17  ;;  %v889_v50 = vld [vmem:[%s1695_s5 + $0x58] sm:$0xff]  ;;  %913 = vst [vmem:[%s1695_s5 + $0x18] sm:$0xff] %v897_v39  ;;  %v903_v51 = vadd.f32 %v887_v47, %v1493_v61  ;;  %v904_v52 = vadd.f32 %v888_v46, %v1481_v49  ;;  %v890_v57 = vld [vmem:[%s1695_s5 + $0x60] sm:$0xff] }
 0x232   : > { %914 = vst [vmem:[%s1695_s5 + $0x20] sm:$0xff] %v898_v41  ;;  %915 = vst [vmem:[%s1695_s5 + $0x28] sm:$0xff] %v899_v27  ;;  %v905_v56 = vadd.f32 %v889_v50, %v1490_v60  ;;  %v891_v55 = vld [vmem:[%s1695_s5 + $0x68] sm:$0xff]  ;;  %v892_v58 = vld [vmem:[%s1695_s5 + $0x70] sm:$0xff]  ;;  %v906_v49 = vadd.f32 %v890_v57, %v1504_v26 }
 0x233   : > { %916 = vst [vmem:[%s1695_s5 + $0x30] sm:$0xff] %v900_v44  ;;  %917 = vst [vmem:[%s1695_s5 + $0x38] sm:$0xff] %v901_v45  ;;  %v907_v59 = vadd.f32 %v891_v55, %v851_v63  ;;  %v908_v60 = vadd.f32 %v892_v58, %v1500_v20  ;;  %v893_v19 = vld [vmem:[%s1695_s5 + $0x78] sm:$0xff] }
 0x234   : > { %918 = vst [vmem:[%s1695_s5 + $0x40] sm:$0xff] %v902_v48  ;;  %919 = vst [vmem:[%s1695_s5 + $0x48] sm:$0xff] %v903_v51  ;;  %v909_v61 = vadd.f32 %v893_v19, %v1508_v30 }
 0x235   : > { %920 = vst [vmem:[%s1695_s5 + $0x50] sm:$0xff] %v904_v52  ;;  %921 = vst [vmem:[%s1695_s5 + $0x58] sm:$0xff] %v905_v56 }
 0x236   : > { %922 = vst [vmem:[%s1695_s5 + $0x60] sm:$0xff] %v906_v49  ;;  %923 = vst [vmem:[%s1695_s5 + $0x68] sm:$0xff] %v907_v59 }
 0x237   : > { %924 = vst [vmem:[%s1695_s5 + $0x70] sm:$0xff] %v908_v60  ;;  %925 = vst [vmem:[%s1695_s5 + $0x78] sm:$0xff] %v909_v61 }
 0x238 PF: > { %s15_s20 = sadd.s32 1, %s1280_s20   ;;  %s1696_s18 = smov %s1276_s19 }
 0x239   : > { %p12_p7 = scmp.ge.s32.totalorder %s15_s20, 4   ;;  %s1697_s19 = smov %s1699_s21 }
 0x23b   :  { %14 = sbr.rel (!%p12_p7) target bundleno = 2 (0x2), region = 87 }

</bundles_post_ra>
